<compile_context>
chip_gen: v7x
topology: tpu7x:2x2x1
jax: 0.10.0
libtpu: 0.0.40
codegen_flags: <defaults>
</compile_context>

<pallas_src>
import functools

import jax
import jax.numpy as jnp
from jax.experimental import pallas as pl
from jax.experimental.pallas import tpu as pltpu

EPS = 1e-6
F_PAD = 128  # lane-dense feature width (TPU lane count)

_VMEM = pl.BlockSpec(memory_space=pltpu.MemorySpace.VMEM)


# ----------------------------------------------------------------------------
# Fused kernel
# ----------------------------------------------------------------------------
def _bn_train(y, gamma, beta):
    """BatchNorm1d training-mode stats with folded affine.

    Stats/scale/shift are computed on (1, F) rows; the (B, F) tile only pays
    one multiply and one add per element.  Padded lanes of `y` are exactly
    zero, giving zero mean / zero shift, so they remain exactly zero.
    """
    inv_b = jnp.float32(1.0 / y.shape[0])
    s1 = jnp.sum(y, axis=0, keepdims=True)        # (1, F)
    s2 = jnp.sum(y * y, axis=0, keepdims=True)    # (1, F)
    mean = s1 * inv_b
    var = s2 * inv_b - mean * mean                # biased variance
    scale = gamma * jax.lax.rsqrt(var + EPS)      # EUP rsqrt, (1, F)
    shift = beta - mean * scale                   # (1, F)
    return y * scale + shift


def _fused_kernel(x_ref, *refs, n_dense):
    """bn -> (dense -> bn -> relu) * (n_dense-1) -> dense -> bn, one kernel.

    refs = [gamma0, beta0, (w_i, gamma_{i+1}, beta_{i+1}) * n_dense, out].
    The dense bias is omitted: it cancels exactly under the training-mode
    BatchNorm that follows every dense layer (see module docstring).
    """
    o_ref = refs[-1]
    g0_ref, bt0_ref = refs[0], refs[1]
    layer_refs = refs[2:2 + 3 * n_dense]

    x = _bn_train(x_ref[...].astype(jnp.float32), g0_ref[...], bt0_ref[...])
    for i in range(n_dense):                      # unrolled in Python
        w_ref, g_ref, bt_ref = layer_refs[3 * i:3 * i + 3]
        y = jnp.dot(x, w_ref[...], preferred_element_type=jnp.float32)
        y = _bn_train(y, g_ref[...], bt_ref[...])
        if i < n_dense - 1:                       # ReLU on hidden layers only
            y = jnp.maximum(y, 0.0)
        x = y
    o_ref[...] = x.astype(o_ref.dtype)            # lane-dense (B, F_PAD) store


# ----------------------------------------------------------------------------
# Parameters (deterministic, PyTorch-style init shapes) and lane padding
# ----------------------------------------------------------------------------
def init_params(key, dim, num_hiddens):
    """Linear weights stored already transposed: (fan_in, fan_out)."""
    sizes = [dim] + list(num_hiddens) + [dim]
    params = {"dense": [], "bn": []}
    for f in sizes:  # one BN before the stack, one after each dense
        params["bn"].append((jnp.ones((1, f), jnp.float32),    # gamma
                             jnp.zeros((1, f), jnp.float32)))  # beta
    for i in range(len(sizes) - 1):
        fin, fout = sizes[i], sizes[i + 1]
        key, kw, kb = jax.random.split(key, 3)
        bound = 1.0 / float(fin) ** 0.5
        w = jax.random.uniform(kw, (fin, fout), jnp.float32, -bound, bound)
        b = jax.random.uniform(kb, (1, fout), jnp.float32, -bound, bound)
        params["dense"].append((w, b))
    return params


def _pad_cols(v, width):
    return jnp.pad(v, [(0, 0)] * (v.ndim - 1) + [(0, width - v.shape[-1])])


def pad_params(params):
    """Zero-pad all kernel-visible parameters to 128-lane-dense shapes (once).

    Dense biases are intentionally NOT padded/passed: they cancel under the
    training-mode BatchNorm that follows each dense layer.
    """
    padded = {"dense_w": [], "bn": []}
    for g, b in params["bn"]:
        gp = jnp.ones((1, F_PAD), jnp.float32).at[:, :g.shape[1]].set(g)
        bp = _pad_cols(b, F_PAD)
        padded["bn"].append((gp, bp))
    for w, _b in params["dense"]:
        wp = (jnp.zeros((F_PAD, F_PAD), jnp.float32)
              .at[:w.shape[0], :w.shape[1]].set(w))
        padded["dense_w"].append(wp)
    return padded


# ----------------------------------------------------------------------------
# Forward pass: one pallas_call for the whole network
# ----------------------------------------------------------------------------
@functools.partial(jax.jit, static_argnames=("dim",))
def feed_forward_subnet(padded_params, x, *, dim):
    batch = x.shape[0]
    x_pad = _pad_cols(x.astype(jnp.float32), F_PAD)           # (B, 128)

    n_dense = len(padded_params["dense_w"])
    inputs = [x_pad, *padded_params["bn"][0]]
    for i in range(n_dense):
        inputs += [padded_params["dense_w"][i], *padded_params["bn"][i + 1]]

    out_pad = pl.pallas_call(
        functools.partial(_fused_kernel, n_dense=n_dense),
        out_shape=jax.ShapeDtypeStruct((batch, F_PAD), jnp.float32),
        in_specs=[_VMEM] * len(inputs),
        out_specs=_VMEM,
        compiler_params=pltpu.CompilerParams(
            vmem_limit_bytes=32 * 1024 * 1024),
    )(*inputs)
    return out_pad[:, :dim]


# ----------------------------------------------------------------------------
# Pure-JAX reference (bias INCLUDED, exactly mirroring the PyTorch module)
# ----------------------------------------------------------------------------
def _bn_ref(x, gamma, beta):
    mean = jnp.mean(x, axis=0, keepdims=True)
    var = jnp.mean((x - mean) ** 2, axis=0, keepdims=True)
    return (x - mean) / jnp.sqrt(var + EPS) * gamma + beta


def reference_forward(params, x):
    x = _bn_ref(x, *params["bn"][0])
    n_dense = len(params["dense"])
    for i in range(n_dense):
        w, b = params["dense"][i]
        x = _bn_ref(x @ w + b, *params["bn"][i + 1])
        if i < n_dense - 1:
            x = jnp.maximum(x, 0.0)
    return x


if __name__ == "__main__":
    batch = 8
    dim = 4
    num_hiddens = [32, 32]

    key = jax.random.PRNGKey(0)
    key, kx = jax.random.split(key)
    x = jax.random.normal(kx, (batch, dim), jnp.float32)

    params = init_params(key, dim, num_hiddens)
    padded = pad_params(params)

    out = jax.block_until_ready(feed_forward_subnet(padded, x, dim=dim))
    ref = jax.block_until_ready(reference_forward(params, x))

    assert out.shape == (batch, dim)
    assert jnp.allclose(out, ref, atol=1e-4, rtol=1e-4), "mismatch vs reference"

    print("KERNEL_OK")
</pallas_src>

<mosaic_0001>
module attributes {stable_mosaic.version = 11 : i64} {
  func.func @_fused_kernel(%arg0: memref<8x128xf32, #tpu.memory_space<vmem>>, %arg1: memref<1x128xf32, #tpu.memory_space<vmem>>, %arg2: memref<1x128xf32, #tpu.memory_space<vmem>>, %arg3: memref<128x128xf32, #tpu.memory_space<vmem>>, %arg4: memref<1x128xf32, #tpu.memory_space<vmem>>, %arg5: memref<1x128xf32, #tpu.memory_space<vmem>>, %arg6: memref<128x128xf32, #tpu.memory_space<vmem>>, %arg7: memref<1x128xf32, #tpu.memory_space<vmem>>, %arg8: memref<1x128xf32, #tpu.memory_space<vmem>>, %arg9: memref<128x128xf32, #tpu.memory_space<vmem>>, %arg10: memref<1x128xf32, #tpu.memory_space<vmem>>, %arg11: memref<1x128xf32, #tpu.memory_space<vmem>>, %arg12: memref<8x128xf32, #tpu.memory_space<vmem>>) attributes {dimension_semantics = [], scalar_prefetch = 0 : i64, scratch_operands = 0 : i64, tpu.core_type = #tpu.core_type<tc>} {
    %c0 = arith.constant 0 : index
    %c0_0 = arith.constant 0 : index
    %0 = vector.load %arg0[%c0, %c0_0] : memref<8x128xf32, #tpu.memory_space<vmem>>, vector<8x128xf32>
    %c0_1 = arith.constant 0 : index
    %c0_2 = arith.constant 0 : index
    %1 = vector.load %arg1[%c0_1, %c0_2] : memref<1x128xf32, #tpu.memory_space<vmem>>, vector<1x128xf32>
    %c0_3 = arith.constant 0 : index
    %c0_4 = arith.constant 0 : index
    %2 = vector.load %arg2[%c0_3, %c0_4] : memref<1x128xf32, #tpu.memory_space<vmem>>, vector<1x128xf32>
    %cst = arith.constant dense<0.000000e+00> : vector<128xf32>
    %3 = vector.multi_reduction <add>, %0, %cst [0] : vector<8x128xf32> to vector<128xf32>
    %4 = vector.shape_cast %3 : vector<128xf32> to vector<1x128xf32>
    %5 = arith.mulf %0, %0 : vector<8x128xf32>
    %cst_5 = arith.constant dense<0.000000e+00> : vector<128xf32>
    %6 = vector.multi_reduction <add>, %5, %cst_5 [0] : vector<8x128xf32> to vector<128xf32>
    %7 = vector.shape_cast %6 : vector<128xf32> to vector<1x128xf32>
    %cst_6 = arith.constant 1.250000e-01 : f32
    %8 = vector.broadcast %cst_6 : f32 to vector<1x128xf32>
    %9 = arith.mulf %4, %8 : vector<1x128xf32>
    %cst_7 = arith.constant 1.250000e-01 : f32
    %10 = vector.broadcast %cst_7 : f32 to vector<1x128xf32>
    %11 = arith.mulf %7, %10 : vector<1x128xf32>
    %12 = arith.mulf %9, %9 : vector<1x128xf32>
    %13 = arith.subf %11, %12 : vector<1x128xf32>
    %cst_8 = arith.constant 9.99999997E-7 : f32
    %14 = vector.broadcast %cst_8 : f32 to vector<1x128xf32>
    %15 = arith.addf %13, %14 : vector<1x128xf32>
    %16 = math.rsqrt %15 : vector<1x128xf32>
    %17 = arith.mulf %1, %16 : vector<1x128xf32>
    %18 = arith.mulf %9, %17 : vector<1x128xf32>
    %19 = arith.subf %2, %18 : vector<1x128xf32>
    %20 = vector.broadcast %17 : vector<1x128xf32> to vector<8x128xf32>
    %21 = arith.mulf %0, %20 : vector<8x128xf32>
    %22 = vector.broadcast %19 : vector<1x128xf32> to vector<8x128xf32>
    %23 = arith.addf %21, %22 : vector<8x128xf32>
    %c0_9 = arith.constant 0 : index
    %c0_10 = arith.constant 0 : index
    %24 = vector.load %arg3[%c0_9, %c0_10] : memref<128x128xf32, #tpu.memory_space<vmem>>, vector<128x128xf32>
    %cst_11 = arith.constant dense<0.000000e+00> : vector<8x128xf32>
    %25 = tpu.matmul %23, %24, %cst_11 {dimension_numbers = #tpu.dot_dimension_numbers<[1], [0], [0], [1], [0, 0, 1, 1], [], []>} : vector<8x128xf32>, vector<128x128xf32>, vector<8x128xf32> -> vector<8x128xf32>
    %c0_12 = arith.constant 0 : index
    %c0_13 = arith.constant 0 : index
    %26 = vector.load %arg4[%c0_12, %c0_13] : memref<1x128xf32, #tpu.memory_space<vmem>>, vector<1x128xf32>
    %c0_14 = arith.constant 0 : index
    %c0_15 = arith.constant 0 : index
    %27 = vector.load %arg5[%c0_14, %c0_15] : memref<1x128xf32, #tpu.memory_space<vmem>>, vector<1x128xf32>
    %cst_16 = arith.constant dense<0.000000e+00> : vector<128xf32>
    %28 = vector.multi_reduction <add>, %25, %cst_16 [0] : vector<8x128xf32> to vector<128xf32>
    %29 = vector.shape_cast %28 : vector<128xf32> to vector<1x128xf32>
    %30 = arith.mulf %25, %25 : vector<8x128xf32>
    %cst_17 = arith.constant dense<0.000000e+00> : vector<128xf32>
    %31 = vector.multi_reduction <add>, %30, %cst_17 [0] : vector<8x128xf32> to vector<128xf32>
    %32 = vector.shape_cast %31 : vector<128xf32> to vector<1x128xf32>
    %cst_18 = arith.constant 1.250000e-01 : f32
    %33 = vector.broadcast %cst_18 : f32 to vector<1x128xf32>
    %34 = arith.mulf %29, %33 : vector<1x128xf32>
    %cst_19 = arith.constant 1.250000e-01 : f32
    %35 = vector.broadcast %cst_19 : f32 to vector<1x128xf32>
    %36 = arith.mulf %32, %35 : vector<1x128xf32>
    %37 = arith.mulf %34, %34 : vector<1x128xf32>
    %38 = arith.subf %36, %37 : vector<1x128xf32>
    %cst_20 = arith.constant 9.99999997E-7 : f32
    %39 = vector.broadcast %cst_20 : f32 to vector<1x128xf32>
    %40 = arith.addf %38, %39 : vector<1x128xf32>
    %41 = math.rsqrt %40 : vector<1x128xf32>
    %42 = arith.mulf %26, %41 : vector<1x128xf32>
    %43 = arith.mulf %34, %42 : vector<1x128xf32>
    %44 = arith.subf %27, %43 : vector<1x128xf32>
    %45 = vector.broadcast %42 : vector<1x128xf32> to vector<8x128xf32>
    %46 = arith.mulf %25, %45 : vector<8x128xf32>
    %47 = vector.broadcast %44 : vector<1x128xf32> to vector<8x128xf32>
    %48 = arith.addf %46, %47 : vector<8x128xf32>
    %cst_21 = arith.constant 0.000000e+00 : f32
    %49 = vector.broadcast %cst_21 : f32 to vector<8x128xf32>
    %50 = arith.maximumf %48, %49 : vector<8x128xf32>
    %c0_22 = arith.constant 0 : index
    %c0_23 = arith.constant 0 : index
    %51 = vector.load %arg6[%c0_22, %c0_23] : memref<128x128xf32, #tpu.memory_space<vmem>>, vector<128x128xf32>
    %cst_24 = arith.constant dense<0.000000e+00> : vector<8x128xf32>
    %52 = tpu.matmul %50, %51, %cst_24 {dimension_numbers = #tpu.dot_dimension_numbers<[1], [0], [0], [1], [0, 0, 1, 1], [], []>} : vector<8x128xf32>, vector<128x128xf32>, vector<8x128xf32> -> vector<8x128xf32>
    %c0_25 = arith.constant 0 : index
    %c0_26 = arith.constant 0 : index
    %53 = vector.load %arg7[%c0_25, %c0_26] : memref<1x128xf32, #tpu.memory_space<vmem>>, vector<1x128xf32>
    %c0_27 = arith.constant 0 : index
    %c0_28 = arith.constant 0 : index
    %54 = vector.load %arg8[%c0_27, %c0_28] : memref<1x128xf32, #tpu.memory_space<vmem>>, vector<1x128xf32>
    %cst_29 = arith.constant dense<0.000000e+00> : vector<128xf32>
    %55 = vector.multi_reduction <add>, %52, %cst_29 [0] : vector<8x128xf32> to vector<128xf32>
    %56 = vector.shape_cast %55 : vector<128xf32> to vector<1x128xf32>
    %57 = arith.mulf %52, %52 : vector<8x128xf32>
    %cst_30 = arith.constant dense<0.000000e+00> : vector<128xf32>
    %58 = vector.multi_reduction <add>, %57, %cst_30 [0] : vector<8x128xf32> to vector<128xf32>
    %59 = vector.shape_cast %58 : vector<128xf32> to vector<1x128xf32>
    %cst_31 = arith.constant 1.250000e-01 : f32
    %60 = vector.broadcast %cst_31 : f32 to vector<1x128xf32>
    %61 = arith.mulf %56, %60 : vector<1x128xf32>
    %cst_32 = arith.constant 1.250000e-01 : f32
    %62 = vector.broadcast %cst_32 : f32 to vector<1x128xf32>
    %63 = arith.mulf %59, %62 : vector<1x128xf32>
    %64 = arith.mulf %61, %61 : vector<1x128xf32>
    %65 = arith.subf %63, %64 : vector<1x128xf32>
    %cst_33 = arith.constant 9.99999997E-7 : f32
    %66 = vector.broadcast %cst_33 : f32 to vector<1x128xf32>
    %67 = arith.addf %65, %66 : vector<1x128xf32>
    %68 = math.rsqrt %67 : vector<1x128xf32>
    %69 = arith.mulf %53, %68 : vector<1x128xf32>
    %70 = arith.mulf %61, %69 : vector<1x128xf32>
    %71 = arith.subf %54, %70 : vector<1x128xf32>
    %72 = vector.broadcast %69 : vector<1x128xf32> to vector<8x128xf32>
    %73 = arith.mulf %52, %72 : vector<8x128xf32>
    %74 = vector.broadcast %71 : vector<1x128xf32> to vector<8x128xf32>
    %75 = arith.addf %73, %74 : vector<8x128xf32>
    %cst_34 = arith.constant 0.000000e+00 : f32
    %76 = vector.broadcast %cst_34 : f32 to vector<8x128xf32>
    %77 = arith.maximumf %75, %76 : vector<8x128xf32>
    %c0_35 = arith.constant 0 : index
    %c0_36 = arith.constant 0 : index
    %78 = vector.load %arg9[%c0_35, %c0_36] : memref<128x128xf32, #tpu.memory_space<vmem>>, vector<128x128xf32>
    %cst_37 = arith.constant dense<0.000000e+00> : vector<8x128xf32>
    %79 = tpu.matmul %77, %78, %cst_37 {dimension_numbers = #tpu.dot_dimension_numbers<[1], [0], [0], [1], [0, 0, 1, 1], [], []>} : vector<8x128xf32>, vector<128x128xf32>, vector<8x128xf32> -> vector<8x128xf32>
    %c0_38 = arith.constant 0 : index
    %c0_39 = arith.constant 0 : index
    %80 = vector.load %arg10[%c0_38, %c0_39] : memref<1x128xf32, #tpu.memory_space<vmem>>, vector<1x128xf32>
    %c0_40 = arith.constant 0 : index
    %c0_41 = arith.constant 0 : index
    %81 = vector.load %arg11[%c0_40, %c0_41] : memref<1x128xf32, #tpu.memory_space<vmem>>, vector<1x128xf32>
    %cst_42 = arith.constant dense<0.000000e+00> : vector<128xf32>
    %82 = vector.multi_reduction <add>, %79, %cst_42 [0] : vector<8x128xf32> to vector<128xf32>
    %83 = vector.shape_cast %82 : vector<128xf32> to vector<1x128xf32>
    %84 = arith.mulf %79, %79 : vector<8x128xf32>
    %cst_43 = arith.constant dense<0.000000e+00> : vector<128xf32>
    %85 = vector.multi_reduction <add>, %84, %cst_43 [0] : vector<8x128xf32> to vector<128xf32>
    %86 = vector.shape_cast %85 : vector<128xf32> to vector<1x128xf32>
    %cst_44 = arith.constant 1.250000e-01 : f32
    %87 = vector.broadcast %cst_44 : f32 to vector<1x128xf32>
    %88 = arith.mulf %83, %87 : vector<1x128xf32>
    %cst_45 = arith.constant 1.250000e-01 : f32
    %89 = vector.broadcast %cst_45 : f32 to vector<1x128xf32>
    %90 = arith.mulf %86, %89 : vector<1x128xf32>
    %91 = arith.mulf %88, %88 : vector<1x128xf32>
    %92 = arith.subf %90, %91 : vector<1x128xf32>
    %cst_46 = arith.constant 9.99999997E-7 : f32
    %93 = vector.broadcast %cst_46 : f32 to vector<1x128xf32>
    %94 = arith.addf %92, %93 : vector<1x128xf32>
    %95 = math.rsqrt %94 : vector<1x128xf32>
    %96 = arith.mulf %80, %95 : vector<1x128xf32>
    %97 = arith.mulf %88, %96 : vector<1x128xf32>
    %98 = arith.subf %81, %97 : vector<1x128xf32>
    %99 = vector.broadcast %96 : vector<1x128xf32> to vector<8x128xf32>
    %100 = arith.mulf %79, %99 : vector<8x128xf32>
    %101 = vector.broadcast %98 : vector<1x128xf32> to vector<8x128xf32>
    %102 = arith.addf %100, %101 : vector<8x128xf32>
    %c0_47 = arith.constant 0 : index
    %c0_48 = arith.constant 0 : index
    %103 = vector.load %arg12[%c0_47, %c0_48] : memref<8x128xf32, #tpu.memory_space<vmem>>, vector<8x128xf32>
    tpu.vector_store %arg12[%c0_47, %c0_48], %102 {strides = array<i32>} : memref<8x128xf32, #tpu.memory_space<vmem>>, vector<8x128xf32>,
    return
  }
}

</mosaic_0001>

<bundles_post_ra>
// kernel: feed_forward_subnet.1
= control target key start
LH: loop header
LB: loop body
LE: loop exit
PB: predicated region body
PF: predicated region fallthrough
CT: control target
= control target key end

     0   :  { %17 = vsyncpa [#allocation3], 0  ;;  %s1011_s0 = inlined_call_operand.vmem [shape: f32[8,128], index: 0, kind: input, shape index: {}]   ;;  %s1012_s1 = inlined_call_operand.vmem [shape: f32[1,128], index: 1, kind: input, shape index: {}]   ;;  %s1013_s2 = inlined_call_operand.vmem [shape: f32[1,128], index: 2, kind: input, shape index: {}]   ;;  %s1014_s3 = inlined_call_operand.hbm [shape: f32[128,128], index: 3, kind: input, shape index: {}]   ;;  %s1015_s4 = inlined_call_operand.vmem [shape: f32[1,128], index: 4, kind: input, shape index: {}]   ;;  %s1016_s5 = inlined_call_operand.vmem [shape: f32[1,128], index: 5, kind: input, shape index: {}]   ;;  %s1017_s6 = inlined_call_operand.hbm [shape: f32[128,128], index: 6, kind: input, shape index: {}]   ;;  %s1018_s7 = inlined_call_operand.vmem [shape: f32[1,128], index: 7, kind: input, shape index: {}]   ;;  %s1019_s8 = inlined_call_operand.vmem [shape: f32[1,128], index: 8, kind: input, shape index: {}]   ;;  %s1020_s9 = inlined_call_operand.hbm [shape: f32[128,128], index: 9, kind: input, shape index: {}]   ;;  %s1021_s10 = inlined_call_operand.vmem [shape: f32[1,128], index: 10, kind: input, shape index: {}]   ;;  %s1022_s11 = inlined_call_operand.vmem [shape: f32[1,128], index: 11, kind: input, shape index: {}]   ;;  %s1023_s12 = inlined_call_operand.vmem [shape: f32[8,128], index: 12, kind: output, shape index: {}]  }
   0x1   :  { %18 = vsyncpa [#allocation5], 0  ;;  %s816_s21 = smov [#allocation4]   ;;  %s817_s23 = smov [#allocation2]  }
   0x2   :  { %s46_s22 = sshll.u32 %s816_s21, 4  ;;  %s30_s24 = sshll.u32 %s817_s23, 4  ;;  %s47_s22 = int_to_ptr.vmem [resolvable:$true] %s46_s22  ;;  %s889_s24 = int_to_ptr.vmem [resolvable:$true] %s30_s24 }
   0x3   :  { %s746_s27 = scalar_lea.hbm %s1017_s6, 2048 }
   0x4   :  { %p747_p0 = scmp.ne.s32.totalorder %s1017_s6, %s746_s27  ;;  %p750_p1 = scmp.lt.u32.totalorder %s746_s27, %s1017_s6 }
   0x6   :  { %p752_p2 = pnand %p750_p1, %p747_p0 }
   0x8   :  { %755 = shalt.err (!%p752_p2)
}
   0x9   :  { %s756_s14 = scalar_lea.vmem %s47_s22, 2048  ;;  %p761_p4 = scmp.lt.s32.totalorder %s47_s22, %s47_s22 }
   0xa   :  { %p757_p3 = scmp.ne.s32.totalorder %s47_s22, %s756_s14  ;;  %p762_p5 = scmp.lt.s32.totalorder %s756_s14, %s756_s14 }
   0xc   :  { %p763_p6 = por %p762_p5, %p761_p4 }
   0xe   :  { %p764_p7 = pnand %p763_p6, %p757_p3 }
  0x10   :  { %767 = shalt.err (!%p764_p7)
}
  0x11   :  { %s818_s15 = smov 128   ;;  %s819_s16 = smov 8  }
  0x12   :  { %52 = dma.hbm_to_vmem [thread:$0]  %s1017_s6, 2048, %s47_s22, [#allocation5], %s818_s15, %s818_s15, %s819_s16  }
  0x13   :  { %s768_s21 = scalar_lea.hbm %s1014_s3, 2048 }
  0x14   :  { %p769_p8 = scmp.ne.s32.totalorder %s1014_s3, %s768_s21  ;;  %p772_p9 = scmp.lt.u32.totalorder %s768_s21, %s1014_s3 }
  0x16   :  { %p774_p10 = pnand %p772_p9, %p769_p8 }
  0x18   :  { %777 = shalt.err (!%p774_p10)
}
  0x19   :  { %s778_s28 = scalar_lea.vmem %s889_s24, 2048  ;;  %p783_p12 = scmp.lt.s32.totalorder %s889_s24, %s889_s24 }
  0x1a   :  { %p779_p11 = scmp.ne.s32.totalorder %s889_s24, %s778_s28  ;;  %p784_p13 = scmp.lt.s32.totalorder %s778_s28, %s778_s28 }
  0x1c   :  { %p785_p0 = por %p784_p13, %p783_p12 }
  0x1e   :  { %p786_p1 = pnand %p785_p0, %p779_p11 }
  0x20   :  { %789 = shalt.err (!%p786_p1)
}
  0x21   :  { %36 = dma.hbm_to_vmem [thread:$0]  %s1014_s3, 2048, %s889_s24, [#allocation3], %s818_s15, %s818_s15, %s819_s16  }
  0x22   :  { %s820_s29 = smov [#allocation6]   ;;  %s790_s17 = scalar_lea.hbm %s1020_s9, 2048 }
  0x23   :  { %s62_s30 = sshll.u32 %s820_s29, 4  ;;  %p791_p2 = scmp.ne.s32.totalorder %s1020_s9, %s790_s17  ;;  %s63_s30 = int_to_ptr.vmem [resolvable:$true] %s62_s30 }
  0x24   :  { %p794_p3 = scmp.lt.u32.totalorder %s790_s17, %s1020_s9 }
  0x26   :  { %p796_p4 = pnand %p794_p3, %p791_p2 }
  0x28   :  { %799 = shalt.err (!%p796_p4)
}
  0x29   :  { %s800_s23 = scalar_lea.vmem %s63_s30, 2048  ;;  %p805_p6 = scmp.lt.s32.totalorder %s63_s30, %s63_s30 }
  0x2a   :  { %p801_p5 = scmp.ne.s32.totalorder %s63_s30, %s800_s23  ;;  %p806_p7 = scmp.lt.s32.totalorder %s800_s23, %s800_s23 }
  0x2c   :  { %p807_p8 = por %p806_p7, %p805_p6 }
  0x2e   :  { %p808_p9 = pnand %p807_p8, %p801_p5 }
  0x30   :  { %811 = shalt.err (!%p808_p9)
}
  0x31   :  { %68 = dma.hbm_to_vmem [thread:$0]  %s1020_s9, 2048, %s63_s30, [#allocation5], %s818_s15, %s818_s15, %s819_s16  }
  0x32   :  { %812 = dma.done.wait [#allocation3], 2048  }
  0x33   :  { %813 = vsyncadd [#allocation3], 4294965248 }
  0x34   :  { %814 = dma.done.wait [#allocation5], 4096  }
  0x35   :  { %815 = vsyncadd [#allocation5], 4294963200  ;;  %v821_v0 = vmov 0.0|0.0   ;;  %vm822_vm0 = vmmov 0   ;;  %v823_v1 = vmov 0.0   ;;  %v121_v2 = vld [vmem:[#allocation2] sm:$0xff]  ;;  %v108_v45 = vlaneseq }
  0x36   :  { %658 = vmatprep.subr.bf16.mxu0 %v821_v0  ;;  %585 = vmatprep.mubr.msk.f32.mxu0 %vm822_vm0, %v823_v1  ;;  %v122_v3 = vld [vmem:[#allocation2 + $0x8] sm:$0xff]  ;;  %v123_v4 = vld [vmem:[#allocation2 + $0x10] sm:$0xff]  ;;  %v124_v6 = vld [vmem:[#allocation2 + $0x18] sm:$0xff] }
  0x37   :  { %682 = vmatprep.subr.bf16.mxu1 %v821_v0  ;;  %620 = vmatprep.mubr.msk.f32.mxu1 %vm822_vm0, %v823_v1  ;;  %v659_v5 = vpack.c.bf16 %v122_v3, %v121_v2  ;;  %v662_v7 = vpack.c.bf16 %v124_v6, %v123_v4  ;;  %v125_v8 = vld [vmem:[#allocation2 + $0x20] sm:$0xff]  ;;  %v126_v9 = vld [vmem:[#allocation2 + $0x28] sm:$0xff]  ;;  %v127_v14 = vld [vmem:[#allocation2 + $0x30] sm:$0xff]  ;;  %v109_v46 = vshrl.u32 %v108_v45, 7 }
  0x38   :  { %v82_v10 = vld [vmem:[%s1011_s0] sm:$0xff]  ;;  %v665_v13 = vpack.c.bf16 %v126_v9, %v125_v8  ;;  %v128_v15 = vld [vmem:[#allocation2 + $0x38] sm:$0xff]  ;;  %v130_v22 = vld [vmem:[#allocation2 + $0x48] sm:$0xff] }
  0x39   :  { %660 = vmatpush3.bf16.msra.mxu0 %v659_v5  ;;  %v85_v11 = vrot.slane %v82_v10, 4  ;;  %v91_v12 = vmul.f32 %v82_v10, %v82_v10  ;;  %v668_v20 = vpack.c.bf16 %v128_v15, %v127_v14  ;;  %v129_v21 = vld [vmem:[#allocation2 + $0x40] sm:$0xff]  ;;  %v131_v28 = vld [vmem:[#allocation2 + $0x50] sm:$0xff]  ;;  %v132_v29 = vld [vmem:[#allocation2 + $0x58] sm:$0xff]  ;;  %v961_v48 = vsub.s32 0, %v109_v46 }
  0x3a   :  { %661 = vmatprep.subr.bf16.mxu0 %v821_v0  ;;  %v671_v27 = vpack.c.bf16 %v130_v22, %v129_v21  ;;  %v674_v34 = vpack.c.bf16 %v132_v29, %v131_v28  ;;  %v133_v35 = vld [vmem:[#allocation2 + $0x60] sm:$0xff]  ;;  %v134_v36 = vld [vmem:[#allocation2 + $0x68] sm:$0xff]  ;;  %v135_v41 = vld [vmem:[#allocation2 + $0x70] sm:$0xff] }
  0x3b   :  { %v86_v16 = vadd.f32 %v85_v11, %v82_v10  ;;  %v92_v17 = vrot.slane %v91_v12, 4  ;;  %v677_v40 = vpack.c.bf16 %v134_v36, %v133_v35  ;;  %v136_v42 = vld [vmem:[#allocation2 + $0x78] sm:$0xff]  ;;  %v83_v47 = vld [vmem:[%s1012_s1] sm:$0x1]  ;;  %v247_v59 = vld [vmem:[#allocation4 + $0x8] sm:$0xff] }
  0x3c   :  { %v680_v44 = vpack.c.bf16 %v136_v42, %v135_v41  ;;  %v84_v51 = vld [vmem:[%s1013_s2] sm:$0x1]  ;;  %v248_v61 = vld [vmem:[#allocation4 + $0x10] sm:$0xff]  ;;  %v249_v62 = vld [vmem:[#allocation4 + $0x18] sm:$0xff] }
  0x3d   :  { %663 = vmatpush3.bf16.msra.mxu0 %v662_v7  ;;  %v87_v18 = vrot.slane %v86_v16, 2  ;;  %v93_v19 = vadd.f32 %v92_v17, %v91_v12  ;;  %v246_v58 = vld [vmem:[#allocation4] sm:$0xff]  ;;  %v686_v63 = vpack.c.bf16 %v249_v62, %v248_v61  ;;  %v251_v3 = vld [vmem:[#allocation4 + $0x28] sm:$0xff]  ;;  %v252_v5 = vld [vmem:[#allocation4 + $0x30] sm:$0xff] }
  0x3e   :  { %664 = vmatprep.subr.bf16.mxu0 %v821_v0  ;;  %v683_v60 = vpack.c.bf16 %v247_v59, %v246_v58  ;;  %v250_v2 = vld [vmem:[#allocation4 + $0x20] sm:$0xff]  ;;  %v255_v8 = vld [vmem:[#allocation4 + $0x48] sm:$0xff]  ;;  %v257_v11 = vld [vmem:[#allocation4 + $0x58] sm:$0xff] }
  0x3f   :  { %v88_v23 = vadd.f32 %v87_v18, %v86_v16  ;;  %v94_v24 = vrot.slane %v93_v19, 2  ;;  %v689_v4 = vpack.c.bf16 %v251_v3, %v250_v2  ;;  %v254_v7 = vld [vmem:[#allocation4 + $0x40] sm:$0xff]  ;;  %v259_v14 = vld [vmem:[#allocation4 + $0x68] sm:$0xff]  ;;  %v260_v16 = vld [vmem:[#allocation4 + $0x70] sm:$0xff] }
  0x40   :  { %684 = vmatpush3.bf16.msra.mxu1 %v683_v60  ;;  %v695_v9 = vpack.c.bf16 %v255_v8, %v254_v7  ;;  %v261_v17 = vld [vmem:[#allocation4 + $0x78] sm:$0xff]  ;;  %v208_v42 = vld [vmem:[%s1016_s5] sm:$0x1]  ;;  %v376_v58 = vld [vmem:[#allocation6 + $0x28] sm:$0xff] }
  0x41   :  { %666 = vmatpush3.bf16.msra.mxu0 %v665_v13  ;;  %v89_v25 = vrot.slane %v88_v23, 1  ;;  %v95_v26 = vadd.f32 %v94_v24, %v93_v19  ;;  %685 = vmatprep.subr.bf16.mxu1 %v821_v0  ;;  %v258_v13 = vld [vmem:[#allocation4 + $0x60] sm:$0xff]  ;;  %v704_v18 = vpack.c.bf16 %v261_v17, %v260_v16  ;;  %v377_v60 = vld [vmem:[#allocation6 + $0x30] sm:$0xff]  ;;  %v378_v61 = vld [vmem:[#allocation6 + $0x38] sm:$0xff] }
  0x42   :  { %667 = vmatprep.subr.bf16.mxu0 %v821_v0  ;;  %v701_v15 = vpack.c.bf16 %v259_v14, %v258_v13  ;;  %v716_v62 = vpack.c.bf16 %v378_v61, %v377_v60  ;;  %v380_v2 = vld [vmem:[#allocation6 + $0x48] sm:$0xff] }
  0x43   :  { %v90_v30 = vadd.f32 %v89_v25, %v88_v23  ;;  %v96_v31 = vrot.slane %v95_v26, 1  ;;  %v384_v7 = vld [vmem:[#allocation6 + $0x68] sm:$0xff] }
  0x44   :  { %687 = vmatpush3.bf16.msra.mxu1 %v686_v63  ;;  %v379_v63 = vld [vmem:[#allocation6 + $0x40] sm:$0xff] }
  0x45   :  { %669 = vmatpush3.bf16.msra.mxu0 %v668_v20  ;;  %v97_v32 = vadd.f32 %v96_v31, %v95_v26  ;;  %v98_v33 = vmul.f32 0.125, %v90_v30  ;;  %688 = vmatprep.subr.bf16.mxu1 %v821_v0  ;;  %v719_v3 = vpack.c.bf16 %v380_v2, %v379_v63  ;;  %v457_v63 = vld [vmem:[%s1021_s10] sm:$0x1] }
  0x46   :  { %670 = vmatprep.subr.bf16.mxu0 %v821_v0 }
  0x47   :  { %v99_v37 = vmul.f32 0.125, %v97_v32  ;;  %v100_v38 = vmul.f32 %v98_v33, %v98_v33 }
  0x48   :  { %690 = vmatpush3.bf16.msra.mxu1 %v689_v4  ;;  %v381_v4 = vld [vmem:[#allocation6 + $0x50] sm:$0xff] }
  0x49   :  { %672 = vmatpush3.bf16.msra.mxu0 %v671_v27  ;;  %v101_v39 = vsub.f32 %v99_v37, %v100_v38  ;;  %691 = vmatprep.subr.bf16.mxu1 %v821_v0 }
  0x4a   :  { %673 = vmatprep.subr.bf16.mxu0 %v821_v0 }
  0x4b   :  { %v102_v43 = vadd.f32 1e-06, %v101_v39  ;;  %v207_v39 = vld [vmem:[%s1015_s4] sm:$0x1] }
  0x4d   :  { %675 = vmatpush3.bf16.msra.mxu0 %v674_v34  ;;  %738 = vrsqrt.f32 %v102_v43 }
  0x4e   :  { %676 = vmatprep.subr.bf16.mxu0 %v821_v0 }
  0x51   :  { %678 = vmatpush3.bf16.msra.mxu0 %v677_v40 }
  0x52   :  { %679 = vmatprep.subr.bf16.mxu0 %v821_v0 }
  0x55   :  { %681 = vmatpush3.bf16.msra.mxu0 %v680_v44 }
  0x56   :  { %706 = vmatprep.subr.bf16.mxu0 %v821_v0 }
  0x57   :  { %v739_v49 = vpop.eup %738 }
  0x58   :  { %v104_v50 = vmul.f32 %v739_v49, %v83_v47 }
  0x5a   :  { %v105_v52 = vmul.f32 %v104_v50, %v98_v33  ;;  %v111_v53 = vrot.slane %v104_v50, %v961_v48 }
  0x5c   :  { %v106_v54 = vsub.f32 %v84_v51, %v105_v52  ;;  %v113_v55 = vmul.f32 %v111_v53, %v82_v10  ;;  %v256_v10 = vld [vmem:[#allocation4 + $0x50] sm:$0xff]  ;;  %v371_v51 = vld [vmem:[#allocation6] sm:$0xff]  ;;  %v372_v52 = vld [vmem:[#allocation6 + $0x8] sm:$0xff] }
  0x5d   :  { %v698_v12 = vpack.c.bf16 %v257_v11, %v256_v10  ;;  %v707_v53 = vpack.c.bf16 %v372_v52, %v371_v51  ;;  %v386_v10 = vld [vmem:[#allocation6 + $0x78] sm:$0xff] }
  0x5e   :  { %v118_v56 = vrot.slane %v106_v54, %v961_v48  ;;  %v373_v54 = vld [vmem:[#allocation6 + $0x10] sm:$0xff] }
  0x60   :  { %v120_v57 = vadd.f32 %v118_v56, %v113_v55  ;;  %v374_v55 = vld [vmem:[#allocation6 + $0x18] sm:$0xff] }
  0x61   :  { %v710_v56 = vpack.c.bf16 %v374_v55, %v373_v54 }
  0x62   :  { %586 = vmatmul.mubr.f32.vlgmr.msra.gmra.mrb[0].mxu0 %v120_v57  ;;  %v375_v57 = vld [vmem:[#allocation6 + $0x20] sm:$0xff] }
  0x63   :  { %655 = vmatprep.mubr.msk.f32.mxu0 %vm822_vm0, %v823_v1  ;;  %v253_v1 = vld [vmem:[#allocation4 + $0x38] sm:$0xff]  ;;  %708 = vmatpush3.bf16.msra.mxu0 %v707_v53  ;;  %v713_v59 = vpack.c.bf16 %v376_v58, %v375_v57 }
  0x64   :  { %v692_v6 = vpack.c.bf16 %v253_v1, %v252_v5  ;;  %709 = vmatprep.subr.bf16.mxu0 %v821_v0  ;;  %v382_v5 = vld [vmem:[#allocation6 + $0x58] sm:$0xff] }
  0x65   :  { %v722_v1 = vpack.c.bf16 %v382_v5, %v381_v4  ;;  %v458_v4 = vld [vmem:[%s1022_s11] sm:$0x1] }
  0x66   :  { %693 = vmatpush3.bf16.msra.mxu1 %v692_v6  ;;  %v383_v6 = vld [vmem:[#allocation6 + $0x60] sm:$0xff] }
  0x67   :  { %694 = vmatprep.subr.bf16.mxu1 %v821_v0  ;;  %711 = vmatpush3.bf16.msra.mxu0 %v710_v56  ;;  %v725_v8 = vpack.c.bf16 %v384_v7, %v383_v6 }
  0x68   :  { %712 = vmatprep.subr.bf16.mxu0 %v821_v0 }
  0x6a   :  { %696 = vmatpush3.bf16.msra.mxu1 %v695_v9  ;;  %v385_v9 = vld [vmem:[#allocation6 + $0x70] sm:$0xff] }
  0x6b   :  { %697 = vmatprep.subr.bf16.mxu1 %v821_v0  ;;  %714 = vmatpush3.bf16.msra.mxu0 %v713_v59  ;;  %v728_v11 = vpack.c.bf16 %v386_v10, %v385_v9 }
  0x6c   :  { %715 = vmatprep.subr.bf16.mxu0 %v821_v0 }
  0x6e   :  { %699 = vmatpush3.bf16.msra.mxu1 %v698_v12 }
  0x6f   :  { %700 = vmatprep.subr.bf16.mxu1 %v821_v0  ;;  %717 = vmatpush3.bf16.msra.mxu0 %v716_v62 }
  0x70   :  { %718 = vmatprep.subr.bf16.mxu0 %v821_v0 }
  0x72   :  { %702 = vmatpush3.bf16.msra.mxu1 %v701_v15 }
  0x73   :  { %703 = vmatprep.subr.bf16.mxu1 %v821_v0  ;;  %720 = vmatpush3.bf16.msra.mxu0 %v719_v3 }
  0x74   :  { %721 = vmatprep.subr.bf16.mxu0 %v821_v0 }
  0x76   :  { %705 = vmatpush3.bf16.msra.mxu1 %v704_v18 }
  0x77   :  { %723 = vmatpush3.bf16.msra.mxu0 %v722_v1 }
  0x78   :  { %724 = vmatprep.subr.bf16.mxu0 %v821_v0 }
  0x7b   :  { %726 = vmatpush3.bf16.msra.mxu0 %v725_v8 }
  0x7c   :  { %727 = vmatprep.subr.bf16.mxu0 %v821_v0 }
  0x7f   :  { %729 = vmatpush3.bf16.msra.mxu0 %v728_v11 }
 0x135   :  { %v203_v19 = vpop.f32.mrb[0].mxu0 }
 0x136   :  { %v209_v20 = vrot.slane %v203_v19, 4  ;;  %v215_v21 = vmul.f32 %v203_v19, %v203_v19  ;;  %v587_v22 = vpop.f32.mrb[1].mxu0 }
 0x138   :  { %v210_v23 = vadd.f32 %v209_v20, %v203_v19  ;;  %v216_v24 = vrot.slane %v215_v21, 4 }
 0x13a   :  { %v211_v25 = vrot.slane %v210_v23, 2  ;;  %v217_v26 = vadd.f32 %v216_v24, %v215_v21 }
 0x13c   :  { %v212_v27 = vadd.f32 %v211_v25, %v210_v23  ;;  %v218_v28 = vrot.slane %v217_v26, 2 }
 0x13e   :  { %v213_v29 = vrot.slane %v212_v27, 1  ;;  %v219_v30 = vadd.f32 %v218_v28, %v217_v26 }
 0x140   :  { %v214_v31 = vadd.f32 %v213_v29, %v212_v27  ;;  %v220_v32 = vrot.slane %v219_v30, 1 }
 0x142   :  { %v221_v33 = vadd.f32 %v220_v32, %v219_v30  ;;  %v222_v34 = vmul.f32 0.125, %v214_v31  ;;  %v332_v31 = vld [vmem:[%s1018_s7] sm:$0x1] }
 0x144   :  { %v223_v35 = vmul.f32 0.125, %v221_v33  ;;  %v224_v36 = vmul.f32 %v222_v34, %v222_v34 }
 0x146   :  { %v225_v37 = vsub.f32 %v223_v35, %v224_v36 }
 0x148   :  { %v226_v38 = vadd.f32 1e-06, %v225_v37 }
 0x14a   :  { %740 = vrsqrt.f32 %v226_v38 }
 0x154   :  { %v741_v40 = vpop.eup %740 }
 0x155   :  { %v228_v41 = vmul.f32 %v741_v40, %v207_v39 }
 0x157   :  { %v235_v43 = vrot.slane %v228_v41, %v961_v48  ;;  %v229_v44 = vmul.f32 %v228_v41, %v222_v34  ;;  %v333_v34 = vld [vmem:[%s1019_s8] sm:$0x1] }
 0x159   :  { %v230_v45 = vsub.f32 %v208_v42, %v229_v44  ;;  %v237_v46 = vmul.f32 %v235_v43, %v203_v19 }
 0x15b   :  { %v242_v47 = vrot.slane %v230_v45, %v961_v48 }
 0x15d   :  { %v244_v49 = vadd.f32 %v242_v47, %v237_v46 }
 0x15f   :  { %v245_v50 = vmax.f32 %v244_v49, 0.0 }
 0x161   :  { %621 = vmatmul.mubr.f32.vlgmr.msra.gmra.mrb[0].mxu1 %v245_v50 }
 0x234   :  { %v328_v12 = vpop.f32.mrb[0].mxu1 }
 0x235   :  { %v334_v13 = vrot.slane %v328_v12, 4  ;;  %v340_v14 = vmul.f32 %v328_v12, %v328_v12  ;;  %v622_v15 = vpop.f32.mrb[1].mxu1 }
 0x237   :  { %v335_v16 = vadd.f32 %v334_v13, %v328_v12  ;;  %v341_v17 = vrot.slane %v340_v14, 4 }
 0x239   :  { %v336_v18 = vrot.slane %v335_v16, 2  ;;  %v342_v19 = vadd.f32 %v341_v17, %v340_v14 }
 0x23b   :  { %v337_v20 = vadd.f32 %v336_v18, %v335_v16  ;;  %v343_v21 = vrot.slane %v342_v19, 2 }
 0x23d   :  { %v338_v22 = vrot.slane %v337_v20, 1  ;;  %v344_v23 = vadd.f32 %v343_v21, %v342_v19 }
 0x23f   :  { %v339_v24 = vadd.f32 %v338_v22, %v337_v20  ;;  %v345_v25 = vrot.slane %v344_v23, 1 }
 0x241   :  { %v346_v26 = vadd.f32 %v345_v25, %v344_v23  ;;  %v347_v0 = vmul.f32 0.125, %v339_v24 }
 0x243   :  { %v348_v27 = vmul.f32 0.125, %v346_v26  ;;  %v349_v28 = vmul.f32 %v347_v0, %v347_v0 }
 0x245   :  { %v350_v29 = vsub.f32 %v348_v27, %v349_v28 }
 0x247   :  { %v351_v30 = vadd.f32 1e-06, %v350_v29 }
 0x249   :  { %742 = vrsqrt.f32 %v351_v30 }
 0x253   :  { %v743_v32 = vpop.eup %742 }
 0x254   :  { %v353_v33 = vmul.f32 %v743_v32, %v332_v31 }
 0x256   :  { %v354_v35 = vmul.f32 %v353_v33, %v347_v0  ;;  %v360_v36 = vrot.slane %v353_v33, %v961_v48 }
 0x258   :  { %v355_v37 = vsub.f32 %v333_v34, %v354_v35  ;;  %v362_v38 = vmul.f32 %v360_v36, %v328_v12 }
 0x25a   :  { %v367_v39 = vrot.slane %v355_v37, %v961_v48 }
 0x25c   :  { %v369_v40 = vadd.f32 %v367_v39, %v362_v38 }
 0x25e   :  { %v370_v41 = vmax.f32 %v369_v40, 0.0 }
 0x260   :  { %656 = vmatmul.mubr.f32.vlgmr.msra.gmra.mrb[2].mxu0 %v370_v41 }
 0x333   :  { %v453_v42 = vpop.f32.mrb[2].mxu0 }
 0x334   :  { %v459_v43 = vrot.slane %v453_v42, 4  ;;  %v465_v44 = vmul.f32 %v453_v42, %v453_v42  ;;  %v657_v45 = vpop.f32.mrb[3].mxu0 }
 0x336   :  { %v460_v46 = vadd.f32 %v459_v43, %v453_v42  ;;  %v466_v47 = vrot.slane %v465_v44, 4 }
 0x338   :  { %v461_v49 = vrot.slane %v460_v46, 2  ;;  %v467_v50 = vadd.f32 %v466_v47, %v465_v44 }
 0x33a   :  { %v462_v51 = vadd.f32 %v461_v49, %v460_v46  ;;  %v468_v52 = vrot.slane %v467_v50, 2 }
 0x33c   :  { %v463_v53 = vrot.slane %v462_v51, 1  ;;  %v469_v54 = vadd.f32 %v468_v52, %v467_v50 }
 0x33e   :  { %v464_v55 = vadd.f32 %v463_v53, %v462_v51  ;;  %v470_v56 = vrot.slane %v469_v54, 1 }
 0x340   :  { %v471_v57 = vadd.f32 %v470_v56, %v469_v54  ;;  %v472_v58 = vmul.f32 0.125, %v464_v55 }
 0x342   :  { %v473_v59 = vmul.f32 0.125, %v471_v57  ;;  %v474_v60 = vmul.f32 %v472_v58, %v472_v58 }
 0x344   :  { %v475_v61 = vsub.f32 %v473_v59, %v474_v60 }
 0x346   :  { %v476_v62 = vadd.f32 1e-06, %v475_v61 }
 0x348   :  { %744 = vrsqrt.f32 %v476_v62 }
 0x352   :  { %v745_v2 = vpop.eup %744 }
 0x353   :  { %v478_v3 = vmul.f32 %v745_v2, %v457_v63 }
 0x355   :  { %v479_v5 = vmul.f32 %v478_v3, %v472_v58  ;;  %v485_v1 = vrot.slane %v478_v3, %v961_v48 }
 0x357   :  { %v480_v6 = vsub.f32 %v458_v4, %v479_v5  ;;  %v487_v7 = vmul.f32 %v485_v1, %v453_v42 }
 0x359   :  { %v492_v8 = vrot.slane %v480_v6, %v961_v48 }
 0x35b   :  { %v494_v9 = vadd.f32 %v492_v8, %v487_v7 }
 0x35d   :  { %495 = vst [vmem:[%s1023_s12] sm:$0xff] %v494_v9 }
 0x35e   :  { %500 = vsyncpa [#allocation3], 1 }
 0x35f   :  { %501 = vsyncpa [#allocation5], 1 }

</bundles_post_ra>
